<compile_context>
chip_gen: v5e
topology: v5e:2x2
jax: 0.10.0
libtpu: 0.0.40
codegen_flags: <defaults>
</compile_context>

<pallas_src>
import functools
import math

import jax
import jax.numpy as jnp
from jax.experimental import pallas as pl
from jax.experimental.pallas import tpu as pltpu


def _round_up(x, m):
    return ((x + m - 1) // m) * m


def _cdiv(a, b):
    return -(-a // b)


def _lcm(a, b):
    return a * b // math.gcd(a, b)


_INV_SQRT2 = 1.0 / math.sqrt(2.0)


# --------------------------------------------------------------------------------------
# Kernel: phase-fused tap-sum Conv1d -> Fp32 LayerNorm -> exact GELU, one output tile.
# --------------------------------------------------------------------------------------
def _conv_ln_gelu_kernel(*refs, tt, c_out, c_out_p, n_full, d_part, max_shift):
    it = iter(refs)
    main_ref = next(it)                                   # (1, tt, d_in)      bf16
    halo_ref = next(it) if max_shift > 0 else None        # (1, 8,  d_in)      bf16
    wfull_ref = next(it) if n_full > 0 else None          # (n_full, d_in, Cp) bf16
    wpart_ref = next(it) if d_part > 0 else None          # (d_part, Cp)       bf16
    g_ref = next(it)                                      # (1, Cp) f32
    b_ref = next(it)                                      # (1, Cp) f32
    o_ref = next(it)                                      # (1, tt, Cp)

    main = main_ref[0]                                    # (tt, d_in) bf16
    if max_shift > 0:
        # window = main tile + 8-row halo (both aligned; halo duplication < 3%)
        zt = jnp.concatenate([main, halo_ref[0]], axis=0)  # (tt + 8, d_in)
    else:
        zt = main

    acc = jnp.zeros((tt, c_out_p), jnp.float32)
    # full taps: bf16 input slice (aligned f32 accumulate, tt matmul rows)
    for q in range(n_full):
        xq = main if q == 0 else zt[q:q + tt, :]
        acc = acc + jnp.dot(xq, wfull_ref[q], preferred_element_type=jnp.float32)
    # partially-populated last tap: lane-sliced input, no zero contraction rows
    if d_part > 0:
        q = n_full
        xq = main[:, :d_part] if q == 0 else zt[q:q + tt, :d_part]
        acc = acc + jnp.dot(xq, wpart_ref[...], preferred_element_type=jnp.float32)

    # Fp32LayerNorm (two-pass, exact reference numerics in f32).  Padded output lanes
    # of acc are exact zeros (zero weight columns), so sum/ c_out gives the true mean.
    inv_n = jnp.float32(1.0 / c_out)
    mean = jnp.sum(acc, axis=-1, keepdims=True) * inv_n
    centered = acc - mean
    if c_out_p != c_out:
        lane = jax.lax.broadcasted_iota(jnp.int32, (1, c_out_p), 1)
        centered = jnp.where(lane < c_out, centered, 0.0)
    var = jnp.sum(centered * centered, axis=-1, keepdims=True) * inv_n
    y = centered * jax.lax.rsqrt(var + jnp.float32(1e-5))
    y = y * g_ref[...] + b_ref[...]                       # padded lanes: gamma=beta=0

    # nn.GELU default = exact erf formulation; gelu(0) = 0 keeps padded lanes zero.
    out = 0.5 * y * (1.0 + jax.lax.erf(y * jnp.float32(_INV_SQRT2)))
    o_ref[0] = out.astype(o_ref.dtype)


# --------------------------------------------------------------------------------------
# Static planning (hoisted out of the forward path).
# --------------------------------------------------------------------------------------
def _vmem_budget_bytes():
    # generation-aware tile budget: big-VMEM parts (v5e/v6e, 128 MiB) get bigger tiles,
    # v7x (64 MiB / TC) smaller ones.  Always well under the scoped limit we request.
    try:
        cap = pltpu.get_tpu_info().vmem_capacity_bytes
    except Exception:
        cap = 64 * 1024 * 1024
    return (20 if cap >= 100 * 1024 * 1024 else 10) * 1024 * 1024


def _choose_tt(f_out, base, batch, d_in, c_out_p, w_bytes, out_bytes, tt_max, budget):
    tt_cap = max(base, (tt_max // base) * base)
    tt = min(tt_cap, _round_up(f_out, base))
    # keep >= ~4 grid steps per layer (v7x megacore + deeper DMA pipeline)
    if batch * _cdiv(f_out, tt) < 4:
        want_tiles = _cdiv(4, batch)
        tt = min(tt, max(base, _round_up(_cdiv(f_out, want_tiles), base)))

    def est(t):
        return (2 * t * d_in * 2              # main window (double-buffered, bf16)
                + 2 * 8 * d_in * 2            # halo (double-buffered, bf16)
                + 2 * w_bytes                 # weights + LN params (double-buffered)
                + 2 * t * c_out_p * out_bytes  # output tile (double-buffered)
                + t * d_in * 2                # in-kernel window copy
                + 3 * t * c_out_p * 4)        # f32 acc / LN / GELU temporaries

    while tt > base and est(tt) > budget:
        tt -= base
    return tt


def prepare_params(params, batch, time_len, tt_max=512):
    """Once-per-parameter-set prep: fused per-tap weights, padded LN params, and the
    static tiling/length plan.  NOT part of the steady-state forward path."""
    num_layers = len(params)
    budget = _vmem_budget_bytes()

    frames, f = [], time_len
    for (_w, _g, _b, K, s) in params:
        f = (f - int(K)) // int(s) + 1
        assert f >= 1, "input too short for this conv stack"
        frames.append(f)

    plans = []
    c_in, c_in_p = 1, 1
    for i, (w, g, b, K, s) in enumerate(params):
        K, s = int(K), int(s)
        c_out = int(w.shape[0])
        c_out_p = _round_up(c_out, 128)
        if i == 0:
            # layer 0 (C_in == 1): pre-built (time, K) patches padded to 128 lanes (MXU path)
            assert K <= 128
            d_in, n_full, d_part, max_shift = 128, 1, 0, 0
        else:
            n_q = _cdiv(K, s)                       # taps after phase fusion
            r_last = K - (n_q - 1) * s              # phases used by the last tap
            d_in = s * c_in_p
            if r_last == s:
                n_full, d_part = n_q, 0
            else:
                n_full, d_part = n_q - 1, r_last * c_in_p
            max_shift = n_q - 1
            assert max_shift <= 8, "8-row halo assumes ceil(K/s) <= 9"
        s_next = int(params[i + 1][4]) if i + 1 < num_layers else 1
        base = _lcm(8, s_next)                      # keeps next layer's reshape free
        out_bytes = 4 if i == num_layers - 1 else 2
        w_bytes = (n_full * d_in + d_part) * c_out_p * 2 + 2 * c_out_p * 4
        tt = _choose_tt(frames[i], base, batch, d_in, c_out_p, w_bytes, out_bytes,
                        tt_max, budget)
        plans.append(dict(K=K, s=s, c_in=c_in, c_in_p=c_in_p, c_out=c_out,
                          c_out_p=c_out_p, d_in=d_in, n_full=n_full, d_part=d_part,
                          max_shift=max_shift, tt=tt, F=frames[i], out_bytes=out_bytes))
        c_in, c_in_p = c_out, c_out_p

    # backward pass: choose tile counts so each layer produces exactly what the next
    # layer's tiling + halo needs (no wrapper pads/copies of intermediate activations).
    need_rows = 0
    for i in reversed(range(num_layers)):
        p = plans[i]
        rows_needed = max(p["F"], need_rows)
        p["n_t"] = _cdiv(rows_needed, p["tt"])
        halo = 8 if p["max_shift"] > 0 else 0
        fused_req = p["n_t"] * p["tt"] + halo
        if i > 0:
            need_rows = fused_req * p["s"]
        else:
            p["x_len"] = (p["n_t"] * p["tt"] - 1) * p["s"] + p["K"]

    # fused per-tap weights (bf16) and LN params (f32), zero-padded to 128-lane channels
    for i, (w, g, b, _K, _s) in enumerate(params):
        p = plans[i]
        w = jnp.asarray(w, jnp.float32)
        if i == 0:
            wf = jnp.zeros((1, 128, p["c_out_p"]), jnp.float32)
            wf = wf.at[0, :p["K"], :p["c_out"]].set(jnp.transpose(w[:, 0, :]))
            p["wfull"], p["wpart"] = wf.astype(jnp.bfloat16), None
        else:
            cip = p["c_in_p"]
            wf = (jnp.zeros((p["n_full"], p["d_in"], p["c_out_p"]), jnp.float32)
                  if p["n_full"] > 0 else None)
            wp = (jnp.zeros((p["d_part"], p["c_out_p"]), jnp.float32)
                  if p["d_part"] > 0 else None)
            for k in range(p["K"]):
                q, r = divmod(k, p["s"])
                wk = jnp.transpose(w[:, :, k])        # (c_in, c_out)
                if q < p["n_full"]:
                    wf = wf.at[q, r * cip:r * cip + p["c_in"], :p["c_out"]].set(wk)
                else:
                    wp = wp.at[r * cip:r * cip + p["c_in"], :p["c_out"]].set(wk)
            p["wfull"] = None if wf is None else wf.astype(jnp.bfloat16)
            p["wpart"] = None if wp is None else wp.astype(jnp.bfloat16)
        p["gamma"] = jnp.zeros((1, p["c_out_p"]), jnp.float32).at[0, :p["c_out"]].set(
            jnp.asarray(g, jnp.float32))
        p["beta"] = jnp.zeros((1, p["c_out_p"]), jnp.float32).at[0, :p["c_out"]].set(
            jnp.asarray(b, jnp.float32))
    return plans


# --------------------------------------------------------------------------------------
# One ConvolutionBlock as a pallas_call.
# --------------------------------------------------------------------------------------
def _run_block(z, p, batch):
    tt, n_t, d_in, c_out_p = p["tt"], p["n_t"], p["d_in"], p["c_out_p"]
    out_dtype = jnp.float32 if p["out_bytes"] == 4 else jnp.bfloat16
    tpb = tt // 8

    inputs, in_specs = [], []
    inputs.append(z)
    in_specs.append(pl.BlockSpec((1, tt, d_in), lambda b_, t_: (b_, t_, 0)))
    if p["max_shift"] > 0:
        inputs.append(z)  # same array, 8-row halo view following the main tile
        in_specs.append(pl.BlockSpec(
            (1, 8, d_in), lambda b_, t_, _tpb=tpb: (b_, (t_ + 1) * _tpb, 0)))
    if p["wfull"] is not None:
        inputs.append(p["wfull"])
        in_specs.append(pl.BlockSpec((p["n_full"], d_in, c_out_p),
                                     lambda b_, t_: (0, 0, 0)))
    if p["wpart"] is not None:
        inputs.append(p["wpart"])
        in_specs.append(pl.BlockSpec((p["d_part"], c_out_p), lambda b_, t_: (0, 0)))
    inputs.append(p["gamma"])
    in_specs.append(pl.BlockSpec((1, c_out_p), lambda b_, t_: (0, 0)))
    inputs.append(p["beta"])
    in_specs.append(pl.BlockSpec((1, c_out_p), lambda b_, t_: (0, 0)))

    kern = functools.partial(
        _conv_ln_gelu_kernel, tt=tt, c_out=p["c_out"], c_out_p=c_out_p,
        n_full=p["n_full"], d_part=p["d_part"], max_shift=p["max_shift"])

    steps = batch * n_t
    flops = 2 * steps * tt * (p["n_full"] * d_in + p["d_part"]) * c_out_p
    transcendentals = steps * tt * c_out_p
    bytes_accessed = (steps * (tt + (8 if p["max_shift"] else 0)) * d_in * 2
                      + (p["wfull"].size * 2 if p["wfull"] is not None else 0)
                      + (p["wpart"].size * 2 if p["wpart"] is not None else 0)
                      + steps * tt * c_out_p * p["out_bytes"])

    return pl.pallas_call(
        kern,
        out_shape=jax.ShapeDtypeStruct((batch, n_t * tt, c_out_p), out_dtype),
        grid=(batch, n_t),
        in_specs=in_specs,
        out_specs=pl.BlockSpec((1, tt, c_out_p), lambda b_, t_: (b_, t_, 0)),
        compiler_params=pltpu.CompilerParams(
            dimension_semantics=("parallel", "parallel"),
            vmem_limit_bytes=48 * 1024 * 1024),
        cost_estimate=pl.CostEstimate(flops=flops,
                                      transcendentals=transcendentals,
                                      bytes_accessed=bytes_accessed),
    )(*inputs)


def convolution_forward(x, plans):
    """Full Convolution module.  x: (Batch, Time) f32 -> (Batch, Dimension, Frame) f32."""
    batch = x.shape[0]

    # ---- layer 0 (C_in = 1): tiny (time, K) patches, padded to 128 lanes -> MXU ----
    p0 = plans[0]
    rows0, k0, s0 = p0["n_t"] * p0["tt"], p0["K"], p0["s"]
    xp = x.astype(jnp.float32)
    if p0["x_len"] > xp.shape[1]:
        xp = jnp.pad(xp, ((0, 0), (0, p0["x_len"] - xp.shape[1])))
    else:
        xp = xp[:, :p0["x_len"]]
    cols = [xp[:, k:k + (rows0 - 1) * s0 + 1:s0] for k in range(k0)]  # each (B, rows0)
    patches = jnp.stack(cols, axis=-1)                                 # (B, rows0, K)
    patches = jnp.pad(patches, ((0, 0), (0, 0), (0, 128 - k0))).astype(jnp.bfloat16)
    a = _run_block(patches, p0, batch)
    # TODO(synk): dropout is identity at inference (p=0.0 default); not implemented.
    # TODO(synk): conv_bias=True path not implemented (module default is bias=False).

    # ---- remaining layers: phase-fused stride-1 conv, free contiguous reshape ----
    for p in plans[1:]:
        rows, cp = a.shape[1], a.shape[2]
        assert rows % p["s"] == 0
        z = a.reshape(batch, rows // p["s"], p["s"] * cp)
        a = _run_block(z, p, batch)

    last = plans[-1]
    y = a[:, :last["F"], :last["c_out"]]
    return jnp.transpose(y, (0, 2, 1)).astype(jnp.float32)  # single final transpose


def init_params(key, conv_layers):
    """Deterministic parameter init matching the module __init__ shapes."""
    params = []
    in_d = 1
    for (dim, kernel, stride) in conv_layers:
        key, wk = jax.random.split(key)
        # kaiming_normal_ (fan_in, gain=sqrt(2)) on Conv1d weight (C_out, C_in, K), bias=False.
        std = math.sqrt(2.0 / (in_d * kernel))
        w = jax.random.normal(wk, (dim, in_d, kernel), dtype=jnp.float32) * std
        ln_g = jnp.ones((dim,), jnp.float32)   # Fp32LayerNorm elementwise_affine defaults
        ln_b = jnp.zeros((dim,), jnp.float32)
        params.append((w, ln_g, ln_b, kernel, stride))
        in_d = dim
    return params


if __name__ == "__main__":
    key = jax.random.PRNGKey(0)
    key, xk = jax.random.split(key)

    # (channel, kernel, stride) bottom-to-top, small synthetic config.
    conv_layers = [(32, 5, 2), (32, 3, 2)]
    B, T = 2, 64
    x = jax.random.normal(xk, (B, T), dtype=jnp.float32)

    params = init_params(key, conv_layers)
    prepared = prepare_params(params, B, T)      # hoisted weight/plan prep (once)

    y = convolution_forward(x, prepared)
    jax.block_until_ready(y)

    # sanity: (Batch, Dimension, Frame) = (2, 32, 14) for T=64 with these layers
    assert y.shape == (2, 32, 14), y.shape
    assert bool(jnp.all(jnp.isfinite(y)))
    print("KERNEL_OK")
</pallas_src>

<mosaic_0001>
module attributes {stable_mosaic.version = 11 : i64} {
  func.func @_conv_ln_gelu_kernel(%arg0: i32, %arg1: i32, %arg2: memref<1x16x128xbf16, #tpu.memory_space<vmem>>, %arg3: memref<1x128x128xbf16, #tpu.memory_space<vmem>>, %arg4: memref<1x128xf32, #tpu.memory_space<vmem>>, %arg5: memref<1x128xf32, #tpu.memory_space<vmem>>, %arg6: memref<1x16x128xbf16, #tpu.memory_space<vmem>>) attributes {dimension_semantics = [#tpu.dimension_semantics<parallel>, #tpu.dimension_semantics<parallel>], iteration_bounds = array<i64: 2, 3>, scalar_prefetch = 0 : i64, scratch_operands = 0 : i64, tpu.core_type = #tpu.core_type<tc>, window_params = [{transform_indices = @transform_0, window_bounds = array<i64: 1, 16, 128>}, {pipeline_mode = #tpu.pipeline_mode<synchronous>, transform_indices = @transform_1, window_bounds = array<i64: 1, 128, 128>}, {pipeline_mode = #tpu.pipeline_mode<synchronous>, transform_indices = @transform_2, window_bounds = array<i64: 1, 128>}, {pipeline_mode = #tpu.pipeline_mode<synchronous>, transform_indices = @transform_3, window_bounds = array<i64: 1, 128>}, {transform_indices = @transform_4, window_bounds = array<i64: 1, 16, 128>}]} {
    %c0 = arith.constant 0 : index
    %c0_0 = arith.constant 0 : index
    %c0_1 = arith.constant 0 : index
    %0 = vector.load %arg2[%c0, %c0_0, %c0_1] : memref<1x16x128xbf16, #tpu.memory_space<vmem>>, vector<1x16x128xbf16>
    %1 = vector.shape_cast %0 : vector<1x16x128xbf16> to vector<16x128xbf16>
    %cst = arith.constant 0.000000e+00 : f32
    %2 = vector.broadcast %cst : f32 to vector<16x128xf32>
    %c0_2 = arith.constant 0 : index
    %c0_3 = arith.constant 0 : index
    %c0_4 = arith.constant 0 : index
    %3 = vector.load %arg3[%c0_2, %c0_3, %c0_4] : memref<1x128x128xbf16, #tpu.memory_space<vmem>>, vector<1x128x128xbf16>
    %4 = vector.shape_cast %3 : vector<1x128x128xbf16> to vector<128x128xbf16>
    %cst_5 = arith.constant dense<0.000000e+00> : vector<16x128xf32>
    %5 = tpu.matmul %1, %4, %cst_5 {dimension_numbers = #tpu.dot_dimension_numbers<[1], [0], [0], [1], [0, 0, 1, 1], [], []>} : vector<16x128xbf16>, vector<128x128xbf16>, vector<16x128xf32> -> vector<16x128xf32>
    %6 = arith.addf %2, %5 : vector<16x128xf32>
    %cst_6 = arith.constant dense<0.000000e+00> : vector<16xf32>
    %7 = vector.multi_reduction <add>, %6, %cst_6 [1] : vector<16x128xf32> to vector<16xf32>
    %8 = vector.shape_cast %7 : vector<16xf32> to vector<16x1xf32>
    %cst_7 = arith.constant 3.125000e-02 : f32
    %9 = vector.broadcast %cst_7 : f32 to vector<16x1xf32>
    %10 = arith.mulf %8, %9 : vector<16x1xf32>
    %11 = vector.broadcast %10 : vector<16x1xf32> to vector<16x128xf32>
    %12 = arith.subf %6, %11 : vector<16x128xf32>
    %13 = tpu.iota {dimensions = array<i32: 1>} : vector<1x128xi32>
    %c32_i32 = arith.constant 32 : i32
    %14 = vector.broadcast %c32_i32 : i32 to vector<1x128xi32>
    %15 = arith.cmpi slt, %13, %14 : vector<1x128xi32>
    %cst_8 = arith.constant 0.000000e+00 : f32
    %16 = vector.shape_cast %15 : vector<1x128xi1> to vector<1x128xi1>
    %17 = vector.broadcast %16 : vector<1x128xi1> to vector<16x128xi1>
    %18 = vector.broadcast %cst_8 : f32 to vector<16x128xf32>
    %19 = arith.select %17, %12, %18 : vector<16x128xi1>, vector<16x128xf32>
    %20 = arith.mulf %19, %19 : vector<16x128xf32>
    %cst_9 = arith.constant dense<0.000000e+00> : vector<16xf32>
    %21 = vector.multi_reduction <add>, %20, %cst_9 [1] : vector<16x128xf32> to vector<16xf32>
    %22 = vector.shape_cast %21 : vector<16xf32> to vector<16x1xf32>
    %cst_10 = arith.constant 3.125000e-02 : f32
    %23 = vector.broadcast %cst_10 : f32 to vector<16x1xf32>
    %24 = arith.mulf %22, %23 : vector<16x1xf32>
    %cst_11 = arith.constant 9.99999974E-6 : f32
    %25 = vector.broadcast %cst_11 : f32 to vector<16x1xf32>
    %26 = arith.addf %24, %25 : vector<16x1xf32>
    %27 = math.rsqrt %26 : vector<16x1xf32>
    %28 = vector.broadcast %27 : vector<16x1xf32> to vector<16x128xf32>
    %29 = arith.mulf %19, %28 : vector<16x128xf32>
    %c0_12 = arith.constant 0 : index
    %c0_13 = arith.constant 0 : index
    %30 = vector.load %arg4[%c0_12, %c0_13] : memref<1x128xf32, #tpu.memory_space<vmem>>, vector<1x128xf32>
    %31 = vector.broadcast %30 : vector<1x128xf32> to vector<16x128xf32>
    %32 = arith.mulf %29, %31 : vector<16x128xf32>
    %c0_14 = arith.constant 0 : index
    %c0_15 = arith.constant 0 : index
    %33 = vector.load %arg5[%c0_14, %c0_15] : memref<1x128xf32, #tpu.memory_space<vmem>>, vector<1x128xf32>
    %34 = vector.broadcast %33 : vector<1x128xf32> to vector<16x128xf32>
    %35 = arith.addf %32, %34 : vector<16x128xf32>
    %cst_16 = arith.constant 5.000000e-01 : f32
    %36 = vector.broadcast %cst_16 : f32 to vector<16x128xf32>
    %37 = arith.mulf %36, %35 : vector<16x128xf32>
    %cst_17 = arith.constant 0.707106769 : f32
    %38 = vector.broadcast %cst_17 : f32 to vector<16x128xf32>
    %39 = arith.mulf %35, %38 : vector<16x128xf32>
    %40 = math.erf %39 : vector<16x128xf32>
    %cst_18 = arith.constant 1.000000e+00 : f32
    %41 = vector.broadcast %cst_18 : f32 to vector<16x128xf32>
    %42 = arith.addf %41, %40 : vector<16x128xf32>
    %43 = arith.mulf %37, %42 : vector<16x128xf32>
    %44 = arith.truncf %43 : vector<16x128xf32> to vector<16x128xbf16>
    %c0_19 = arith.constant 0 : index
    %c0_20 = arith.constant 0 : index
    %c0_21 = arith.constant 0 : index
    %45 = vector.load %arg6[%c0_19, %c0_20, %c0_21] : memref<1x16x128xbf16, #tpu.memory_space<vmem>>, vector<1x16x128xbf16>
    %46 = vector.shape_cast %45 : vector<1x16x128xbf16> to vector<16x128xbf16>
    %47 = vector.shape_cast %44 : vector<16x128xbf16> to vector<1x16x128xbf16>
    tpu.vector_store %arg6[%c0_19, %c0_20, %c0_21], %47 {strides = array<i32>} : memref<1x16x128xbf16, #tpu.memory_space<vmem>>, vector<1x16x128xbf16>,
    return
  }
  func.func @transform_0(%arg0: i32, %arg1: i32) -> (i32, i32, i32) {
    %c0_i32 = arith.constant 0 : i32
    %c0_i32_0 = arith.constant 0 : i32
    return %arg0, %arg1, %c0_i32 : i32, i32, i32
  }
  func.func @transform_1(%arg0: i32, %arg1: i32) -> (i32, i32, i32) {
    %c0_i32 = arith.constant 0 : i32
    %c0_i32_0 = arith.constant 0 : i32
    %c0_i32_1 = arith.constant 0 : i32
    %c0_i32_2 = arith.constant 0 : i32
    return %c0_i32, %c0_i32_0, %c0_i32_1 : i32, i32, i32
  }
  func.func @transform_2(%arg0: i32, %arg1: i32) -> (i32, i32) {
    %c0_i32 = arith.constant 0 : i32
    %c0_i32_0 = arith.constant 0 : i32
    %c0_i32_1 = arith.constant 0 : i32
    return %c0_i32, %c0_i32_0 : i32, i32
  }
  func.func @transform_3(%arg0: i32, %arg1: i32) -> (i32, i32) {
    %c0_i32 = arith.constant 0 : i32
    %c0_i32_0 = arith.constant 0 : i32
    %c0_i32_1 = arith.constant 0 : i32
    return %c0_i32, %c0_i32_0 : i32, i32
  }
  func.func @transform_4(%arg0: i32, %arg1: i32) -> (i32, i32, i32) {
    %c0_i32 = arith.constant 0 : i32
    %c0_i32_0 = arith.constant 0 : i32
    return %arg0, %arg1, %c0_i32 : i32, i32, i32
  }
}

</mosaic_0001>

<bundles_post_ra>
// kernel: tpu_custom_call.1
= control target key start
LH: loop header
LB: loop body
LE: loop exit
PB: predicated region body
PF: predicated region fallthrough
CT: control target
= control target key end

     0   :  { %s1179_s0 = inlined_call_operand.hbm [shape: bf16[2,48,128], index: 0, kind: input, shape index: {}]   ;;  %s1180_s1 = inlined_call_operand.hbm [shape: bf16[1,128,128], index: 1, kind: input, shape index: {}]   ;;  %s1181_s2 = inlined_call_operand.vmem [shape: f32[1,128], index: 2, kind: input, shape index: {}]   ;;  %s1182_s3 = inlined_call_operand.vmem [shape: f32[1,128], index: 3, kind: input, shape index: {}]   ;;  %s1183_s4 = inlined_call_operand.hbm [shape: bf16[2,48,128], index: 4, kind: output, shape index: {}]  }
   0x1   :  { %1193 = sst [smem:[#allocation16_spill]] %s1180_s1 }
   0x2   :  { %1194 = sst [smem:[#allocation17_spill]] %s1183_s4 }
   0x3   :  { %9 = vsyncpa [#allocation3], 0 }
   0x4   :  { %11 = vsyncpa [#allocation3 + $0x1], 0 }
   0x5   :  { %12 = vsyncpa [#allocation6], 0 }
   0x6   :  { %13 = vsyncpa [#allocation4], 0 }
   0x7   :  { %15 = vsyncpa [#allocation4 + $0x1], 0  ;;  %s978_s15 = smov 0   ;;  %s980_s16 = smov 0  }
   0x8   :  { %s982_s17 = smov 0   ;;  %s984_s18 = smov 0  }
   0x9   :  { %s986_s19 = smov 0   ;;  %s988_s20 = smov 0  }
   0xa   :  { %s990_s21 = smov 0   ;;  %s992_s22 = smov 0  }
   0xb LB: > { %1195 = sst [smem:[#allocation11_spill]] %s918_s15  ;;  %s610_s23 = sadd.s32 4294967295, %s946_s22   ;;  %s946_s22 = sphi %s992_s22, %s21_s22   ;;  %s942_s21 = sphi %s990_s21, %s1221_s21   ;;  %s938_s20 = sphi %s988_s20, %s1220_s20   ;;  %s934_s19 = sphi %s986_s19, %s1219_s19   ;;  %s930_s18 = sphi %s984_s18, %s1218_s18   ;;  %s926_s17 = sphi %s982_s17, %s1217_s17   ;;  %s922_s16 = sphi %s980_s16, %s1216_s16   ;;  %s918_s15 = sphi %s978_s15, %s1215_s15  }
   0xc   : > { %s611_s24 = sadd.s32 4294967294, %s946_s22   ;;  %p55_p0 = scmp.ne.s32.totalorder %s922_s16, %s918_s15 }
   0xd   : > { %p1022_p1 = scmp.eq.s32.totalorder %s610_s23, 0  ;;  %p150_p2 = scmp.eq.s32.totalorder %s611_s24, 5 }
   0xe   : > { %p612_p4 = scmp.ge.s32.totalorder %s946_s22, 1  ;;  %p157_p6 = scmp.lt.s32.totalorder %s946_s22, 7 }
   0xf   : > { %p1028_p3 = por %p1022_p1, %p55_p0  ;;  %p1033_p5 = por %p150_p2, %p55_p0 }
  0x10   : > { %s1200_s1 = sld [smem:[#allocation16_spill]]  ;;  %p1041_p7 = pnand %p612_p4, %p157_p6 }
  0x11   : > { %s1198_s27 = scalar_select %p1033_p5, 1, 0 }
  0x12   : > { %p689_p8 = pneg %p1041_p7  ;;  %s948_s6 = smov [#allocation5]  }
  0x13   : > { %1199 = sst [smem:[#allocation12_spill]] %s1198_s27  ;;  %s170_s7 = sshll.u32 %s948_s6, 4  ;;  %s171_s7 = int_to_ptr.vmem [resolvable:$true] %s170_s7 }
  0x14   : > { %p690_p9 = pnand %p689_p8, %p1022_p1  ;;  %s1184_s8 = smov 64  }
  0x15   : > { %s1185_s9 = smov 4   ;;  %s30_s10 = sadd.s32 1, %s938_s20 }
  0x16   : > { %s168_s30 = sshll.u32 %s1200_s1, 4  ;;  %p31_p10 = scmp.ge.s32.totalorder %s30_s10, 3  ;;  %s169_s30 = int_to_ptr.hbm [resolvable:$true] %s168_s30 }
  0x17   : > { %692 = dma.hbm_to_vmem [thread:$0]  (!%p690_p9), %s169_s30, 1024, %s171_s7, [#allocation6], %s1184_s8, %s1184_s8, %s1185_s9  }
  0x18   : > { %s33_s11 = sadd.s32 1, %s942_s21  ;;  %p144_p11 = scmp.eq.s32.totalorder %s610_s23, 5 }
  0x19   : > { %p49_p12 = scmp.ne.s32.totalorder %s926_s17, %s922_s16  ;;  %s1223_s10 = smov (%p31_p10, %s30_s10), 0 }
  0x1a   : > { %1202 = sst [smem:[#allocation13_spill]] %s1223_s10  ;;  %s1225_s11 = smov (!%p31_p10, %s33_s11), %s942_s21 }
  0x1b   : > { %s42_s12 = sadd.s32 1, %s926_s17  ;;  %p50_p13 = scmp.eq.s32.totalorder %s946_s22, 0 }
  0x1c   : > { %p35_p0 = scmp.ge.s32.totalorder %s1225_s11, 2  ;;  %p1061_p2 = por %p144_p11, %p49_p12 }
  0x1d   : > { %s38_s14 = ssub.s32 %s938_s20, %s1223_s10  ;;  %p1067_p4 = por %p50_p13, %p49_p12 }
  0x1e   : > { %s1203_s13 = scalar_select %p1061_p2, 1, 0 }
  0x1f   : > { %s1227_s11 = smov (%p35_p0, %s1225_s11), 0  ;;  %p702_p6 = scmp.lt.s32.totalorder %s946_s22, 6 }
  0x20   : > { %1204 = sst [smem:[#allocation14_spill]] %s1203_s13  ;;  %s190_s23 = sand.u32 1, %s926_s17  }
  0x21   : > { %1206 = sst [smem:[#allocation15_spill]] %s1227_s11  ;;  %s37_s28 = ssub.s32 %s942_s21, %s1227_s11 }
  0x22   : > { %s616_s29 = sshll.u32 %s938_s20, 1  ;;  %s39_s30 = sor.u32 %s38_s14, %s37_s28 }
  0x23   : > { %s615_s6 = sshll.u32 %s190_s23, 3  ;;  %p40_p8 = scmp.eq.s32.totalorder %s39_s30, 0 }
  0x24   : > { %s679_s7 = smul.u32 6, %s942_s21  ;;  %s194_s8 = scalar_lea.vmem [#allocation2], %s615_s6 }
  0x25   : > { %s204_s9 = sshll.u32 %s194_s8, 4  ;;  %p694_p9 = pnand %p702_p6, %p1067_p4  ;;  %s205_s9 = int_to_ptr.vmem [resolvable:$true] %s204_s9 }
  0x26   : > { %s1080_s1 = scalar_select %p40_p8, %s926_s17, %s42_s12  }
  0x27   : > { %s199_s10 = sadd.s32 %s679_s7, %s616_s29  ;;  %s191_s14 = scalar_lea.sflag [#allocation3], %s190_s23 }
  0x28   : > { %s617_s27 = sshll.u32 %s199_s10, 2  ;;  %s1207_s28 = smov 4  }
  0x29   : > { %s201_s4 = scalar_lea.hbm %s1179_s0, %s617_s27  ;;  %s1208_s30 = smov 64  }
  0x2a   : > { %s202_s11 = sshll.u32 %s201_s4, 4  ;;  %216 = sbr.rel (%p1041_p7) target bundleno = 540 (0x21c), region = 36  ;;  %s203_s11 = int_to_ptr.hbm [resolvable:$true] %s202_s11 }
  0x2b   : > { %696 = dma.hbm_to_vmem [thread:$0]  (!%p694_p9), %s203_s11, 128, %s205_s9, %s191_s14, %s1208_s30, %s1208_s30, %s1207_s28  }
  0x2c   : > { %s1095_s8 = sand.u32 (!%p1041_p7), 1, %s922_s16  }
  0x2d   : > { %s619_s15 = sshll.u32 (!%p1041_p7), %s1095_s8, 3  ;;  %s219_s27 = scalar_lea.sflag (!%p1041_p7), [#allocation3], %s1095_s8 }
  0x2e   : > { %s222_s4 = scalar_lea.vmem (!%p1041_p7), [#allocation2], %s619_s15 }
  0x2f   : > { %905 = dma.done.wait (%p1028_p3), %s219_s27, 128  }
  0x30   : > { %907 = vsyncadd (%p1028_p3), %s219_s27, 4294967168 }
  0x31   : > { %909 = dma.done.wait (%p1022_p1), [#allocation6], 1024  }
  0x32   : > { %911 = vsyncadd (%p1022_p1), [#allocation6], 4294966272  ;;  %v673_v0 = vld [vmem:[#allocation5 + $0x38] sm:$0xff]  ;;  %v672_v1 = vld [vmem:[#allocation5 + $0x30] sm:$0xff]  ;;  %v349_v11 = vlaneseq  ;;  %s680_s10 = smul.u32 6, %s934_s19  ;;  %s661_s11 = sshll.u32 %s930_s18, 1 }
  0x33   : > { %327 = vmatpush.bf16.msra.mxu0 %v673_v0  ;;  %v671_v2 = vld [vmem:[#allocation5 + $0x28] sm:$0xff]  ;;  %v670_v3 = vld [vmem:[#allocation5 + $0x20] sm:$0xff]  ;;  %v669_v4 = vld [vmem:[#allocation5 + $0x18] sm:$0xff]  ;;  %s1209_s24 = sld [smem:[#allocation17_spill]]  ;;  %s252_s6 = scalar_lea.vmem [#allocation7], %s619_s15 }
  0x34   : > { %v668_v5 = vld [vmem:[#allocation5 + $0x10] sm:$0xff]  ;;  %v667_v6 = vld [vmem:[#allocation5 + $0x8] sm:$0xff]  ;;  %v666_v7 = vld [vmem:[#allocation5] sm:$0xff]  ;;  %v350_v12 = vand.u32 127, %v349_v11  ;;  %s504_s12 = sadd.s32 %s680_s10, %s661_s11  ;;  %s507_s7 = sshll.u32 %s252_s6, 4  ;;  %s508_s7 = int_to_ptr.vmem [resolvable:$true] %s507_s7 }
  0x35   : > { %v665_v8 = vld [vmem:[%s222_s4] sm:$0xff]  ;;  %s662_s19 = sshll.u32 %s504_s12, 2  ;;  %s493_s28 = scalar_lea.sflag [#allocation4], %s1095_s8 }
  0x36   : > { %vm351_vm0 = vcmp.lt.s32.totalorder %v350_v12, 32  ;;  %v774_v37 = vld [vmem:[%s1181_s2] ss:$0 sm:$0xff] }
  0x37   : > { %328 = vmatpush.bf16.msra.mxu0 %v672_v1  ;;  %v775_v40 = vld [vmem:[%s1182_s3] ss:$0 sm:$0xff] }
  0x39   : > { %s506_s23 = scalar_lea.hbm %s1209_s24, %s662_s19  ;;  %s864_s15 = scalar_lea.hbm %s1209_s24, 48 }
  0x3a   : > { %s509_s14 = sshll.u32 %s506_s23, 4  ;;  %s510_s14 = int_to_ptr.hbm [resolvable:$true] %s509_s14 }
  0x3b   : > { %329 = vmatpush.bf16.msra.mxu0 %v671_v2  ;;  %s858_s30 = sshra.s32 %s510_s14, 4  ;;  %s859_s30 = int_to_ptr.hbm [resolvable:$true] %s858_s30 }
  0x3c   : > { %s860_s27 = scalar_lea.hbm %s859_s30, 8  ;;  %p865_p10 = scmp.lt.s32.totalorder %s859_s30, %s1209_s24 }
  0x3d   : > { %p861_p1 = scmp.ne.s32.totalorder %s859_s30, %s860_s27  ;;  %p866_p11 = scmp.lt.s32.totalorder %s864_s15, %s860_s27 }
  0x3f   : > { %330 = vmatpush.bf16.msra.mxu0 %v670_v3  ;;  %p862_p3 = pnand %p861_p1, %p1061_p2  ;;  %p867_p12 = por %p866_p11, %p865_p10 }
  0x41   : > { %p863_p7 = pneg %p862_p3 }
  0x43   : > { %331 = vmatpush.bf16.msra.mxu0 %v669_v4  ;;  %p868_p13 = pnand %p867_p12, %p863_p7 }
  0x47   : > { %332 = vmatpush.bf16.msra.mxu0 %v668_v5 }
  0x4b   : > { %333 = vmatpush.bf16.msra.mxu0 %v667_v6 }
  0x4f   : > { %334 = vmatpush.bf16.msra.mxu0 %v666_v7 }
  0x52   : > { %335 = vmatmul.bf16.vlgmr.msra.gmra.mxu0 %v665_v8 }
  0xcf   : > { %v336_v9 = vpop.f32.mrf.mxu0 }
  0xd0   : > { %341 = vadd.xlane.f32.xlu0 %v336_v9 }
  0xd7   : > { %v338_v10 = vpop.f32.mrf.mxu0 }
  0xd8   : > { %343 = vadd.xlane.f32.xlu0 %v338_v10 }
 0x143   : > { %v342_v13 = vpop.xlane.xlu0 %341 }
 0x144   : > { %v345_v14 = vmul.f32 0.03125, %v342_v13 }
 0x146   : > { %v347_v15 = vsub.f32 %v336_v9, %v345_v14 }
 0x148   : > { %v354_v16 = vsel %vm351_vm0, %v347_v15, 0.0 }
 0x149   : > { %v356_v17 = vmul.f32 %v354_v16, %v354_v16 }
 0x14b   : > { %358 = vadd.xlane.f32.xlu1 %v356_v17  ;;  %v344_v18 = vpop.xlane.xlu0 %343 }
 0x14c   : > { %v346_v19 = vmul.f32 0.03125, %v344_v18 }
 0x14e   : > { %v348_v20 = vsub.f32 %v338_v10, %v346_v19 }
 0x150   : > { %v355_v21 = vsel %vm351_vm0, %v348_v20, 0.0 }
 0x151   : > { %v357_v22 = vmul.f32 %v355_v21, %v355_v21 }
 0x153   : > { %360 = vadd.xlane.f32.xlu1 %v357_v22 }
 0x1be   : > { %v359_v23 = vpop.xlane.xlu1 %358 }
 0x1bf   : > { %v362_v24 = vmul.f32 0.03125, %v359_v23 }
 0x1c1   : > { %v364_v25 = vadd.f32 1e-05, %v362_v24 }
 0x1c3   : > { %776 = vrsqrt.f32 %v364_v25  ;;  %vm372_vm2 = vweird.f32 %v364_v25 }
 0x1c6   : > { %v361_v26 = vpop.xlane.xlu1 %360 }
 0x1c7   : > { %v363_v27 = vmul.f32 0.03125, %v361_v26 }
 0x1c9   : > { %v777_v28 = vpop.eup %776  ;;  %v365_v29 = vadd.f32 1e-05, %v363_v27 }
 0x1ca   : > { %v367_v30 = vmul.f32 %v777_v28, %v364_v25  ;;  %vm373_vm1 = vweird.f32 %v777_v28 }
 0x1cb   : > { %778 = vrsqrt.f32 %v365_v29  ;;  %vm374_vm3 = vmor %vm372_vm2, %vm373_vm1  ;;  %vm382_vm5 = vweird.f32 %v365_v29 }
 0x1cc   : > { %v368_v31 = vmul.f32 %v777_v28, %v367_v30 }
 0x1ce   : > { %v369_v32 = vmul.f32 0.5, %v368_v31 }
 0x1d0   : > { %v370_v33 = vsub.f32 1.5, %v369_v32 }
 0x1d1   : > { %v779_v34 = vpop.eup %778 }
 0x1d2   : > { %v371_v35 = vmul.f32 %v777_v28, %v370_v33  ;;  %v377_v36 = vmul.f32 %v779_v34, %v365_v29  ;;  %vm383_vm4 = vweird.f32 %v779_v34 }
 0x1d3   : > { %vm384_vm6 = vmor %vm382_vm5, %vm383_vm4 }
 0x1d4   : > { %v375_v38 = vsel %vm374_vm3, %v777_v28, %v371_v35  ;;  %v378_v39 = vmul.f32 %v779_v34, %v377_v36 }
 0x1d5   : > { %v386_v41 = vmul.f32 %v375_v38, %v354_v16 }
 0x1d6   : > { %v379_v42 = vmul.f32 0.5, %v378_v39 }
 0x1d7   : > { %v392_v43 = vmul.f32 %v774_v37, %v386_v41 }
 0x1d8   : > { %v380_v44 = vsub.f32 1.5, %v379_v42 }
 0x1d9   : > { %v1115_v45 = vadd.f32 %v775_v40, %v392_v43 }
 0x1da   : > { %v381_v46 = vmul.f32 %v779_v34, %v380_v44 }
 0x1db   : > { %v1118_v47 = vmul.f32 0.70710677, %v1115_v45 }
 0x1dc   : > { %v385_v48 = vsel %vm384_vm6, %v779_v34, %v381_v46 }
 0x1dd   : > { %v404_v49 = vmul.f32 %v1118_v47, %v1118_v47  ;;  %v387_v50 = vmul.f32 %v385_v48, %v355_v21 }
 0x1df   : > { %v405_v51 = vmin.f32 %v404_v49, 16.0  ;;  %v393_v52 = vmul.f32 %v774_v37, %v387_v50 }
 0x1e1   : > { %v406_v53 = vmul.f32 2.1237322e-06, %v405_v51  ;;  %v417_v54 = vmul.f32 3.8918573e-05, %v405_v51  ;;  %v1122_v55 = vadd.f32 %v775_v40, %v393_v52 }
 0x1e3   : > { %v407_v56 = vadd.f32 0.00028619796, %v406_v53  ;;  %v418_v57 = vadd.f32 0.001143296, %v417_v54  ;;  %v1125_v58 = vmul.f32 0.70710677, %v1122_v55 }
 0x1e5   : > { %v419_v59 = vmul.f32 %v418_v57, %v405_v51  ;;  %v444_v60 = vmul.f32 %v1125_v58, %v1125_v58  ;;  %v408_v61 = vmul.f32 %v407_v56, %v405_v51 }
 0x1e7   : > { %v420_v62 = vadd.f32 0.014752088, %v419_v59  ;;  %v445_v63 = vmin.f32 %v444_v60, 16.0  ;;  %v409_v3 = vadd.f32 0.0036580483, %v408_v61 }
 0x1e9   : > { %v421_v0 = vmul.f32 %v420_v62, %v405_v51  ;;  %v446_v1 = vmul.f32 2.1237322e-06, %v445_v63  ;;  %v457_v2 = vmul.f32 3.8918573e-05, %v445_v63  ;;  %v410_v10 = vmul.f32 %v409_v3, %v405_v51 }
 0x1eb   : > { %v422_v4 = vadd.f32 0.112945676, %v421_v0  ;;  %v447_v5 = vadd.f32 0.00028619796, %v446_v1  ;;  %v458_v6 = vadd.f32 0.001143296, %v457_v2 }
 0x1ec   : > { %v411_v16 = vadd.f32 0.05243302, %v410_v10  ;;  %v401_v0 = vmul.f32 0.5, %v1122_v55 }
 0x1ed   : > { %v423_v7 = vmul.f32 %v422_v4, %v405_v51  ;;  %v448_v8 = vmul.f32 %v447_v5, %v445_v63  ;;  %v459_v9 = vmul.f32 %v458_v6, %v445_v63 }
 0x1ee   : > { %v412_v21 = vmul.f32 %v411_v16, %v405_v51 }
 0x1ef   : > { %v424_v11 = vadd.f32 0.4994258, %v423_v7  ;;  %v449_v12 = vadd.f32 0.0036580483, %v448_v8  ;;  %v460_v13 = vadd.f32 0.014752088, %v459_v9 }
 0x1f0   : > { %v413_v26 = vadd.f32 0.18741608, %v412_v21 }
 0x1f1   : > { %v425_v14 = vmul.f32 %v424_v11, %v405_v51  ;;  %v461_v15 = vmul.f32 %v460_v13, %v445_v63  ;;  %v450_v18 = vmul.f32 %v449_v12, %v445_v63 }
 0x1f2   : > { %v414_v31 = vmul.f32 %v413_v26, %v405_v51 }
 0x1f3   : > { %v426_v17 = vadd.f32 1.0, %v425_v14  ;;  %v462_v19 = vadd.f32 0.112945676, %v461_v15  ;;  %v451_v22 = vadd.f32 0.05243302, %v450_v18 }
 0x1f4   : > { %v415_v37 = vadd.f32 1.1283791, %v414_v31 }
 0x1f5   : > { %780 = vrcp.f32 %v426_v17  ;;  %v463_v20 = vmul.f32 %v462_v19, %v445_v63  ;;  %v452_v28 = vmul.f32 %v451_v22, %v445_v63  ;;  %v438_v33 = vand.u32 2147483648, %v426_v17 }
 0x1f6   : > { %v436_v35 = vand.u32 2147483647, %v426_v17  ;;  %vm432_vm8 = vweird.f32 %v426_v17  ;;  %v416_v44 = vmul.f32 %v415_v37, %v1118_v47 }
 0x1f7   : > { %v464_v23 = vadd.f32 0.4994258, %v463_v20  ;;  %v453_v34 = vadd.f32 0.18741608, %v452_v28  ;;  %v439_v40 = vor.u32 1.1754944e-38, %v438_v33 }
 0x1f8   : > { %vm437_vm10 = vcmp.eq.f32.partialorder %v436_v35, 8.507059e+37 }
 0x1f9   : > { %v465_v24 = vmul.f32 %v464_v23, %v445_v63  ;;  %v454_v41 = vmul.f32 %v453_v34, %v445_v63  ;;  %v400_v63 = vmul.f32 0.5, %v1115_v45 }
 0x1fb   : > { %v781_v25 = vpop.eup %780  ;;  %v466_v29 = vadd.f32 1.0, %v465_v24  ;;  %v455_v48 = vadd.f32 1.1283791, %v454_v41 }
 0x1fc   : > { %v428_v27 = vmul.f32 %v781_v25, %v426_v17  ;;  %vm433_vm7 = vweird.f32 %v781_v25 }
 0x1fd   : > { %782 = vrcp.f32 %v466_v29  ;;  %vm434_vm9 = vmor %vm432_vm8, %vm433_vm7  ;;  %v478_v49 = vand.u32 2147483648, %v466_v29  ;;  %v476_v52 = vand.u32 2147483647, %v466_v29  ;;  %vm472_vm12 = vweird.f32 %v466_v29 }
 0x1fe   : > { %v429_v30 = vsub.f32 1.0, %v428_v27  ;;  %v456_v57 = vmul.f32 %v455_v48, %v1125_v58 }
 0x1ff   : > { %v479_v54 = vor.u32 1.1754944e-38, %v478_v49  ;;  %vm477_vm14 = vcmp.eq.f32.partialorder %v476_v52, 8.507059e+37 }
 0x200   : > { %v430_v32 = vmul.f32 %v781_v25, %v429_v30 }
 0x202   : > { %v431_v36 = vadd.f32 %v781_v25, %v430_v32 }
 0x203   : > { %v783_v38 = vpop.eup %782 }
 0x204   : > { %v435_v39 = vsel %vm434_vm9, %v781_v25, %v431_v36  ;;  %v468_v42 = vmul.f32 %v783_v38, %v466_v29  ;;  %vm473_vm11 = vweird.f32 %v783_v38 }
 0x205   : > { %v440_v43 = vsel %vm437_vm10, %v439_v40, %v435_v39  ;;  %vm474_vm13 = vmor %vm472_vm12, %vm473_vm11 }
 0x206   : > { %v469_v46 = vsub.f32 1.0, %v468_v42  ;;  %v441_v50 = vmul.f32 %v440_v43, %v416_v44 }
 0x208   : > { %v470_v51 = vmul.f32 %v783_v38, %v469_v46  ;;  %v658_v56 = vclamps-f32 %v441_v50, 1.0 }
 0x20a   : > { %v471_v53 = vadd.f32 %v783_v38, %v470_v51  ;;  %v484_v61 = vadd.f32 1.0, %v658_v56 }
 0x20c   : > { %v475_v59 = vsel %vm474_vm13, %v783_v38, %v471_v53  ;;  %v486_v58 = vmul.f32 %v484_v61, %v400_v63 }
 0x20d   : > { %v480_v47 = vsel %vm477_vm14, %v479_v54, %v475_v59 }
 0x20e   : > { %v481_v60 = vmul.f32 %v480_v47, %v456_v57 }
 0x210   : > { %v659_v62 = vclamps-f32 %v481_v60, 1.0 }
 0x212   : > { %v485_v1 = vadd.f32 1.0, %v659_v62 }
 0x214   : > { %v487_v2 = vmul.f32 %v485_v1, %v401_v0 }
 0x216   : > { %v677_v3 = vpack.c.bf16 %v487_v2, %v486_v58 }
 0x218   : > { %678 = vst [vmem:[%s252_s6] sm:$0xff] %v677_v3  }
 0x219   : > { %871 = shalt.err (!%p868_p13)
}
 0x21a   : > { %s951_s8 = smov 64   ;;  %s952_s9 = smov 4  }
 0x21b   : > { %687 = dma.vmem_to_hbm [thread:$0]  (%p1061_p2), %s508_s7, 128, %s510_s14, %s493_s28, %s951_s8, %s951_s8, %s952_s9  }
 0x21c PF: > { %s1211_s10 = sld [smem:[#allocation11_spill]]  ;;  %p704_p0 = scmp.ge.s32.totalorder %s946_s22, 2 }
 0x21e   : > { %p698_p4 = pnand %p704_p0, %p1033_p5 }
 0x220   : > { %p699_p6 = pneg %p698_p4 }
 0x222   : > { %s524_s12 = sand.u32 1, %s1211_s10  }
 0x223   : > { %s525_s19 = scalar_lea.sflag [#allocation4], %s524_s12 }
 0x224   : > { %913 = dma.done.wait (%p699_p6), %s525_s19, 128  }
 0x225   : > { %915 = vsyncadd (%p699_p6), %s525_s19, 4294967168  ;;  %s21_s22 = sadd.s32 1, %s946_s22   ;;  %s1213_s13 = sld [smem:[#allocation13_spill]] }
 0x226   : > { %p18_p8 = scmp.ge.s32.totalorder %s21_s22, 8   ;;  %s1214_s23 = sld [smem:[#allocation15_spill]] }
 0x227   : > { %s1215_s15 = smov %s922_s16  ;;  %s1216_s16 = smov %s926_s17 }
 0x228   : > { %s1217_s17 = smov %s1080_s1  ;;  %s1218_s18 = smov %s938_s20 }
 0x229   : > { %s1219_s19 = smov %s942_s21  ;;  %20 = sbr.rel (!%p18_p8) target bundleno = 11 (0xb), region = 85 }
 0x22b   : > { %s1220_s20 = smov %s1213_s13 }
 0x22c   : > { %s1221_s21 = smov %s1214_s23 }
 0x22e   :  { %531 = vsyncpa [#allocation3], 1 }
 0x22f   :  { %533 = vsyncpa [#allocation3 + $0x1], 1 }
 0x230   :  { %534 = vsyncpa [#allocation6], 1 }
 0x231   :  { %535 = vsyncpa [#allocation4], 1 }
 0x232   :  { %537 = vsyncpa [#allocation4 + $0x1], 1 }

</bundles_post_ra>
